<compile_context>
chip_gen: v7x
topology: tpu7x:2x2x1
jax: 0.10.0
libtpu: 0.0.40
codegen_flags: <defaults>
</compile_context>

<pallas_src>
import functools
import math

import jax
import jax.numpy as jnp
from jax.experimental import pallas as pl
from jax.experimental.pallas import tpu as pltpu


def _round_up(x, m):
    return (x + m - 1) // m * m


def _pad2(a, rows, cols):
    """Zero-pad a 2-D array up to (rows, cols); no-op (no copy) if already sized."""
    pr, pc = rows - a.shape[0], cols - a.shape[1]
    if pr == 0 and pc == 0:
        return a
    return jnp.pad(a, ((0, pr), (0, pc)))


def _vmem_limit_bytes(footprint_bytes):
    # Give the compiler 1.5x the computed live footprint but never ask for more
    # than 48 MiB, so the same config is safe on v7x (64 MiB physical VMEM) as
    # well as v5e/v6e (128 MiB physical, but 16/32 MiB default scoped limits).
    return int(min(48 * 1024 * 1024, max(32 * 1024 * 1024, footprint_bytes * 3 // 2)))


# ---------------------------------------------------------------------------
# Path A: dim_out == 1 — per-row dot product on the VPU/XLU (no MXU), exact f32.
# ---------------------------------------------------------------------------
def _rowdot_kernel(x_ref, w_ref, b_ref, o_ref, acc_ref):
    # x_ref: (tm, tk)  w_ref: (1, tk)  b_ref: (1, 1)  o_ref: (tm, 1)  acc: (tm, tk) f32
    k = pl.program_id(1)

    @pl.when(k == 0)
    def _():
        acc_ref[...] = jnp.zeros_like(acc_ref)

    # VPU-only lane-wise multiply-accumulate.  A (tm,K)x(K,1) MXU matmul would
    # leave 127/128 output lanes idle, so the MXU is deliberately not used.
    acc_ref[...] += x_ref[...] * w_ref[...]

    @pl.when(k == pl.num_programs(1) - 1)
    def _():
        # One cross-lane (XLU) reduction per M tile, epilogue only.
        s = jnp.sum(acc_ref[...], axis=-1, keepdims=True)
        o_ref[...] = (s + b_ref[...]).astype(o_ref.dtype)


def _linear_dimout1(x, weight, bias, *, tm_pref=256, tk_pref=1024):
    batch, dim_in = x.shape

    tm = min(tm_pref, _round_up(batch, 8))
    tk = min(tk_pref, _round_up(dim_in, 128))
    mp = _round_up(batch, tm)
    kp = _round_up(dim_in, tk)

    # Megacore heuristic: for non-trivial sizes create >= 2 "parallel" M blocks
    # so both v7x TensorCores get work (harmless on single-TC v5e/v6e).
    if (batch * dim_in >= (1 << 20) and mp // tm == 1
            and tm >= 16 and (tm // 2) % 8 == 0):
        tm //= 2

    # Only K padding is required for reduction correctness (zero pads add 0).
    x_p = _pad2(x, mp, kp)
    w_p = _pad2(weight, 1, kp)            # stays (1, Kp): no transpose needed
    b_p = bias.reshape(1, 1)

    # Double-buffered x + w tiles, resident acc, double-buffered (tm,1) output.
    footprint = (2 * tm * tk + 2 * tk + tm * tk + 2 * tm + 2) * 4
    cost = pl.CostEstimate(
        flops=2 * batch * dim_in,
        transcendentals=0,
        bytes_accessed=4 * (batch * dim_in + dim_in + batch + 1))

    out = pl.pallas_call(
        _rowdot_kernel,
        out_shape=jax.ShapeDtypeStruct((mp, 1), x.dtype),
        grid_spec=pltpu.PrefetchScalarGridSpec(
            num_scalar_prefetch=0,
            grid=(mp // tm, kp // tk),
            in_specs=[
                pl.BlockSpec((tm, tk), lambda i, k: (i, k)),
                pl.BlockSpec((1, tk), lambda i, k: (0, k)),
                pl.BlockSpec((1, 1), lambda i, k: (0, 0)),
            ],
            out_specs=pl.BlockSpec((tm, 1), lambda i, k: (i, 0)),
            scratch_shapes=[pltpu.VMEM((tm, tk), jnp.float32)],
        ),
        compiler_params=pltpu.CompilerParams(
            dimension_semantics=("parallel", "arbitrary"),
            vmem_limit_bytes=_vmem_limit_bytes(footprint)),
        cost_estimate=cost,
    )(x_p, w_p, b_p)
    return out[:batch, :]


# ---------------------------------------------------------------------------
# Path B: general dim_out — tiled MXU matmul, bf16-in / f32-accumulate by default.
# ---------------------------------------------------------------------------
def _matmul_bias_kernel(x_ref, w_ref, b_ref, o_ref, acc_ref, *, mxu_dtype):
    # x_ref: (tm, tk)  w_ref: (tk, tn)  b_ref: (1, tn)  o_ref: (tm, tn)  acc f32
    k = pl.program_id(2)

    @pl.when(k == 0)
    def _():
        acc_ref[...] = jnp.zeros_like(acc_ref)

    if mxu_dtype == jnp.float32:
        # Exact-f32 fallback: 6-pass MXU emulation (~1/6 of bf16 peak).
        acc_ref[...] += jnp.dot(x_ref[...], w_ref[...],
                                preferred_element_type=jnp.float32,
                                precision=jax.lax.Precision.HIGHEST)
    else:
        # Single-pass bf16 MXU with f32 accumulation (~6x HIGHEST throughput).
        acc_ref[...] += jnp.dot(x_ref[...].astype(mxu_dtype),
                                w_ref[...].astype(mxu_dtype),
                                preferred_element_type=jnp.float32)

    @pl.when(k == pl.num_programs(2) - 1)
    def _():
        # Bias added once, in the epilogue K step only.
        o_ref[...] = (acc_ref[...] + b_ref[...]).astype(o_ref.dtype)


def _linear_general(x, weight, bias, *, mxu_dtype=jnp.bfloat16,
                    tm_pref=256, tn_pref=512, tk_pref=2048):
    batch, dim_in = x.shape
    dim_out = weight.shape[0]

    tm = min(tm_pref, _round_up(batch, 8))
    tn = min(tn_pref, _round_up(dim_out, 128))    # lane-dense output tiles
    tk = min(tk_pref, _round_up(dim_in, 128))

    mp = _round_up(batch, tm)
    np_ = _round_up(dim_out, tn)
    kp = _round_up(dim_in, tk)

    # Megacore heuristic: for non-trivial sizes create >= 2 "parallel" blocks so
    # both v7x TensorCores get work (harmless on single-TC v5e/v6e).
    if (batch * dim_in * dim_out >= (1 << 20)
            and (mp // tm) * (np_ // tn) == 1):
        if tn >= 256 and (tn // 2) % 128 == 0:
            tn //= 2
        elif tm >= 16 and (tm // 2) % 8 == 0:
            tm //= 2

    # One-time O(K*N) wrapper transpose so the kernel contracts ((1,),(0,)):
    # amortized over all M tiles / K steps, and avoids a repeated in-kernel
    # weight-tile transpose (XLU vxpose) on every grid step.
    w_t = weight.T
    # Only the K (reduction) padding is required for correctness; padded M rows
    # and N columns are sliced away below.  Padding is skipped when aligned.
    x_p = _pad2(x, mp, kp)
    w_p = _pad2(w_t, kp, np_)
    b_p = _pad2(bias.reshape(1, dim_out), 1, np_)

    # Double-buffered x/w/out tiles + resident f32 accumulator + bias.
    footprint = (2 * (tm * tk + tk * tn + tm * tn) + tm * tn + 2 * tn) * 4
    cost = pl.CostEstimate(
        flops=2 * batch * dim_in * dim_out,
        transcendentals=0,
        bytes_accessed=4 * (batch * dim_in + dim_in * dim_out
                            + batch * dim_out + dim_out))

    kernel = functools.partial(_matmul_bias_kernel, mxu_dtype=mxu_dtype)
    out = pl.pallas_call(
        kernel,
        out_shape=jax.ShapeDtypeStruct((mp, np_), x.dtype),
        grid_spec=pltpu.PrefetchScalarGridSpec(
            num_scalar_prefetch=0,
            grid=(mp // tm, np_ // tn, kp // tk),
            in_specs=[
                pl.BlockSpec((tm, tk), lambda i, j, k: (i, k)),
                pl.BlockSpec((tk, tn), lambda i, j, k: (k, j)),
                pl.BlockSpec((1, tn), lambda i, j, k: (0, j)),
            ],
            out_specs=pl.BlockSpec((tm, tn), lambda i, j, k: (i, j)),
            scratch_shapes=[pltpu.VMEM((tm, tn), jnp.float32)],
        ),
        compiler_params=pltpu.CompilerParams(
            dimension_semantics=("parallel", "parallel", "arbitrary"),
            vmem_limit_bytes=_vmem_limit_bytes(footprint)),
        cost_estimate=cost,
    )(x_p, w_p, b_p)
    return out[:batch, :dim_out]


def linear2_forward(x, weight, bias, *, mxu_dtype=jnp.bfloat16):
    """y = (x @ weight.T + bias).squeeze()  — matches nn.Linear(...)(x).squeeze().

    x:      (batch, dim_in)   float32
    weight: (dim_out, dim_in) float32  (PyTorch nn.Linear convention)
    bias:   (dim_out,)        float32
    mxu_dtype: jnp.bfloat16 (default, single-pass MXU, f32 accumulate) or
               jnp.float32 (exact, 6-pass MXU emulation).
    """
    dim_out = weight.shape[0]
    if dim_out == 1:
        out = _linear_dimout1(x, weight, bias)        # exact f32, VPU/XLU only
    else:
        out = _linear_general(x, weight, bias, mxu_dtype=mxu_dtype)
    # PyTorch .squeeze() drops ALL size-1 dims (including batch==1); jnp matches.
    return jnp.squeeze(out)


if __name__ == "__main__":
    key = jax.random.PRNGKey(0)
    keys = jax.random.split(key, 9)
    HI = jax.lax.Precision.HIGHEST

    # ---- Case 1: the TME2-style use (dim_out=1 exercises the .squeeze()). ----
    batch, dim_in, dim_out = 8, 32, 1
    x = jax.random.normal(keys[0], (batch, dim_in), dtype=jnp.float32)
    bound = 1.0 / math.sqrt(dim_in)
    weight = jax.random.uniform(keys[1], (dim_out, dim_in), dtype=jnp.float32,
                                minval=-bound, maxval=bound)
    bias = jax.random.uniform(keys[2], (dim_out,), dtype=jnp.float32,
                              minval=-bound, maxval=bound)

    y = jax.block_until_ready(linear2_forward(x, weight, bias))
    y_ref = jnp.squeeze(jnp.dot(x, weight.T, precision=HI) + bias)
    assert y.shape == y_ref.shape == (batch,)
    assert jnp.allclose(y, y_ref, atol=1e-5, rtol=1e-5)   # exact f32 VPU path

    # ---- Case 2: general MXU path (dim_out > 1), bf16-in / f32-accumulate. ----
    batch2, dim_in2, dim_out2 = 16, 64, 8
    x2 = jax.random.normal(keys[3], (batch2, dim_in2), dtype=jnp.float32)
    bound2 = 1.0 / math.sqrt(dim_in2)
    weight2 = jax.random.uniform(keys[4], (dim_out2, dim_in2), dtype=jnp.float32,
                                 minval=-bound2, maxval=bound2)
    bias2 = jax.random.uniform(keys[5], (dim_out2,), dtype=jnp.float32,
                               minval=-bound2, maxval=bound2)

    y2 = jax.block_until_ready(linear2_forward(x2, weight2, bias2))
    y2_ref = jnp.squeeze(jnp.dot(x2, weight2.T, precision=HI) + bias2)
    assert y2.shape == y2_ref.shape == (batch2, dim_out2)
    assert jnp.allclose(y2, y2_ref, atol=2e-2, rtol=2e-2)  # bf16-MXU tolerance

    # ---- Case 3: larger shape — multiple K steps, megacore split heuristic. ----
    batch3, dim_in3, dim_out3 = 64, 3000, 384
    x3 = jax.random.normal(keys[6], (batch3, dim_in3), dtype=jnp.float32)
    bound3 = 1.0 / math.sqrt(dim_in3)
    weight3 = jax.random.uniform(keys[7], (dim_out3, dim_in3), dtype=jnp.float32,
                                 minval=-bound3, maxval=bound3)
    bias3 = jax.random.uniform(keys[8], (dim_out3,), dtype=jnp.float32,
                               minval=-bound3, maxval=bound3)

    y3 = jax.block_until_ready(linear2_forward(x3, weight3, bias3))
    assert y3.shape == (batch3, dim_out3)
    # Apples-to-apples check vs an XLA bf16-in/f32-acc matmul (tight):
    y3_bf = jnp.dot(x3.astype(jnp.bfloat16), weight3.T.astype(jnp.bfloat16),
                    preferred_element_type=jnp.float32) + bias3
    assert jnp.allclose(y3, y3_bf, atol=1e-3, rtol=1e-3)
    # Sanity check vs the exact f32 reference (loose, bf16 rounding admitted):
    y3_ref = jnp.dot(x3, weight3.T, precision=HI) + bias3
    assert jnp.allclose(y3, y3_ref, atol=3e-2, rtol=3e-2)

    print("KERNEL_OK")
</pallas_src>

<mosaic_0001>
module attributes {stable_mosaic.version = 11 : i64} {
  func.func @_rowdot_kernel(%arg0: i32, %arg1: i32, %arg2: memref<8x128xf32, #tpu.memory_space<vmem>>, %arg3: memref<1x128xf32, #tpu.memory_space<vmem>>, %arg4: memref<1x1xf32, #tpu.memory_space<vmem>>, %arg5: memref<8x1xf32, #tpu.memory_space<vmem>>, %arg6: memref<8x128xf32, #tpu.memory_space<vmem>>) attributes {dimension_semantics = [#tpu.dimension_semantics<parallel>, #tpu.dimension_semantics<arbitrary>], iteration_bounds = array<i64: 1, 1>, scalar_prefetch = 0 : i64, scratch_operands = 1 : i64, tpu.core_type = #tpu.core_type<tc>, window_params = [{transform_indices = @transform_0, window_bounds = array<i64: 8, 128>}, {transform_indices = @transform_1, window_bounds = array<i64: 1, 128>}, {pipeline_mode = #tpu.pipeline_mode<synchronous>, transform_indices = @transform_2, window_bounds = array<i64: 1, 1>}, {transform_indices = @transform_3, window_bounds = array<i64: 8, 1>}]} {
    %c0_i32 = arith.constant 0 : i32
    %0 = arith.cmpi eq, %arg1, %c0_i32 : i32
    %1 = arith.extui %0 : i1 to i32
    %c0_i32_0 = arith.constant 0 : i32
    %2 = arith.cmpi ne, %1, %c0_i32_0 : i32
    scf.if %2 {
      %cst = arith.constant 0.000000e+00 : f32
      %13 = vector.broadcast %cst : f32 to vector<8x128xf32>
      %c0_10 = arith.constant 0 : index
      %c0_11 = arith.constant 0 : index
      %14 = vector.load %arg6[%c0_10, %c0_11] : memref<8x128xf32, #tpu.memory_space<vmem>>, vector<8x128xf32>
      tpu.vector_store %arg6[%c0_10, %c0_11], %13 {strides = array<i32>} : memref<8x128xf32, #tpu.memory_space<vmem>>, vector<8x128xf32>,
    } else {
    }
    %c0 = arith.constant 0 : index
    %c0_1 = arith.constant 0 : index
    %3 = vector.load %arg6[%c0, %c0_1] : memref<8x128xf32, #tpu.memory_space<vmem>>, vector<8x128xf32>
    %c0_2 = arith.constant 0 : index
    %c0_3 = arith.constant 0 : index
    %4 = vector.load %arg2[%c0_2, %c0_3] : memref<8x128xf32, #tpu.memory_space<vmem>>, vector<8x128xf32>
    %c0_4 = arith.constant 0 : index
    %c0_5 = arith.constant 0 : index
    %5 = vector.load %arg3[%c0_4, %c0_5] : memref<1x128xf32, #tpu.memory_space<vmem>>, vector<1x128xf32>
    %6 = vector.broadcast %5 : vector<1x128xf32> to vector<8x128xf32>
    %7 = arith.mulf %4, %6 : vector<8x128xf32>
    %8 = arith.addf %3, %7 : vector<8x128xf32>
    %c0_6 = arith.constant 0 : index
    %c0_7 = arith.constant 0 : index
    %9 = vector.load %arg6[%c0_6, %c0_7] : memref<8x128xf32, #tpu.memory_space<vmem>>, vector<8x128xf32>
    tpu.vector_store %arg6[%c0_6, %c0_7], %8 {strides = array<i32>} : memref<8x128xf32, #tpu.memory_space<vmem>>, vector<8x128xf32>,
    %c0_i32_8 = arith.constant 0 : i32
    %10 = arith.cmpi eq, %arg1, %c0_i32_8 : i32
    %11 = arith.extui %10 : i1 to i32
    %c0_i32_9 = arith.constant 0 : i32
    %12 = arith.cmpi ne, %11, %c0_i32_9 : i32
    scf.if %12 {
      %c0_10 = arith.constant 0 : index
      %c0_11 = arith.constant 0 : index
      %13 = vector.load %arg6[%c0_10, %c0_11] : memref<8x128xf32, #tpu.memory_space<vmem>>, vector<8x128xf32>
      %cst = arith.constant dense<0.000000e+00> : vector<8xf32>
      %14 = vector.multi_reduction <add>, %13, %cst [1] : vector<8x128xf32> to vector<8xf32>
      %15 = vector.shape_cast %14 : vector<8xf32> to vector<8x1xf32>
      %c0_12 = arith.constant 0 : index
      %c0_13 = arith.constant 0 : index
      %16 = vector.load %arg4[%c0_12, %c0_13] : memref<1x1xf32, #tpu.memory_space<vmem>>, vector<1x1xf32>
      %17 = vector.broadcast %16 : vector<1x1xf32> to vector<8x1xf32>
      %18 = arith.addf %15, %17 : vector<8x1xf32>
      %c0_14 = arith.constant 0 : index
      %c0_15 = arith.constant 0 : index
      %19 = vector.load %arg5[%c0_14, %c0_15] : memref<8x1xf32, #tpu.memory_space<vmem>>, vector<8x1xf32>
      tpu.vector_store %arg5[%c0_14, %c0_15], %18 {strides = array<i32>} : memref<8x1xf32, #tpu.memory_space<vmem>>, vector<8x1xf32>,
    } else {
    }
    return
  }
  func.func @transform_0(%arg0: i32, %arg1: i32) -> (i32, i32) {
    %c0_i32 = arith.constant 0 : i32
    return %arg0, %arg1 : i32, i32
  }
  func.func @transform_1(%arg0: i32, %arg1: i32) -> (i32, i32) {
    %c0_i32 = arith.constant 0 : i32
    %c0_i32_0 = arith.constant 0 : i32
    return %c0_i32, %arg1 : i32, i32
  }
  func.func @transform_2(%arg0: i32, %arg1: i32) -> (i32, i32) {
    %c0_i32 = arith.constant 0 : i32
    %c0_i32_0 = arith.constant 0 : i32
    %c0_i32_1 = arith.constant 0 : i32
    return %c0_i32, %c0_i32_0 : i32, i32
  }
  func.func @transform_3(%arg0: i32, %arg1: i32) -> (i32, i32) {
    %c0_i32 = arith.constant 0 : i32
    %c0_i32_0 = arith.constant 0 : i32
    return %arg0, %c0_i32 : i32, i32
  }
}

</mosaic_0001>

<bundles_post_ra>
// kernel: tpu_custom_call.1
= control target key start
LH: loop header
LB: loop body
LE: loop exit
PB: predicated region body
PF: predicated region fallthrough
CT: control target
= control target key end

     0   :  { %s135_s0 = inlined_call_operand.hbm [shape: f32[8,128], index: 0, kind: input, shape index: {}]   ;;  %s136_s1 = inlined_call_operand.vmem [shape: f32[1,128], index: 1, kind: input, shape index: {}]   ;;  %s137_s2 = inlined_call_operand.<no memory space> [shape: f32[1,1], index: 2, kind: input, shape index: {}]   ;;  %s138_s3 = inlined_call_operand.vmem [shape: f32[8,1], index: 3, kind: output, shape index: {}]  }
   0x1   :  { %v8_v0 = vstv %s137_s2 }
   0x2   :  { %9 = vst [vmem:[#allocation3] sm:$0x1] %v8_v0 }
   0x3   :  { %10 = vsyncpa [#allocation5], 0  ;;  %s93_s14 = smov [#allocation4]   ;;  %s69_s18 = scalar_lea.hbm %s135_s0, 128 }
   0x4   :  { %s17_s15 = sshll.u32 %s93_s14, 4  ;;  %p70_p0 = scmp.ne.s32.totalorder %s135_s0, %s69_s18  ;;  %s18_s15 = int_to_ptr.vmem [resolvable:$true] %s17_s15 }
   0x5   :  { %p73_p1 = scmp.lt.u32.totalorder %s69_s18, %s135_s0 }
   0x7   :  { %p75_p2 = pnand %p73_p1, %p70_p0 }
   0x9   :  { %78 = shalt.err (!%p75_p2)
}
   0xa   :  { %s79_s2 = scalar_lea.vmem %s18_s15, 128  ;;  %p84_p4 = scmp.lt.s32.totalorder %s18_s15, %s18_s15 }
   0xb   :  { %p80_p3 = scmp.ne.s32.totalorder %s18_s15, %s79_s2  ;;  %p85_p5 = scmp.lt.s32.totalorder %s79_s2, %s79_s2 }
   0xd   :  { %p86_p6 = por %p85_p5, %p84_p4 }
   0xf   :  { %p87_p7 = pnand %p86_p6, %p80_p3 }
  0x11   :  { %90 = shalt.err (!%p87_p7)
}
  0x12   :  { %20 = dma.hbm_to_vmem [thread:$0]  %s135_s0, 128, %s18_s15, [#allocation5]  }
  0x13   :  { %91 = dma.done.wait [#allocation5], 128  }
  0x14   :  { %92 = vsyncadd [#allocation5], 4294967168  ;;  %v34_v1 = vld [vmem:[#allocation4] sm:$0xff]  ;;  %v66_v2 = vld [vmem:[%s136_s1] ss:$0 sm:$0xff]  ;;  %vm59_vm0 = vcmask 7168  }
  0x15   :  { %v42_v3 = vmul.f32 %v66_v2, %v34_v1  ;;  %v67_v4 = vld [vmem:[#allocation3] ss:$0 sm:$0xff] }
  0x17   :  { %49 = vadd.xlane.f32.xlu0 %v42_v3 }
  0xa4   :  { %v50_v5 = vpop.xlane.xlu0 %49 }
  0xa5   :  { %v58_v6 = vadd.f32 %v67_v4, %v50_v5 }
  0xa7   :  { %60 = vst.msk [vmem:[%s138_s3] sm:$0xff] %vm59_vm0, %v58_v6 }
  0xa8   :  { %65 = vsyncpa [#allocation5], 1 }

</bundles_post_ra>
